<compile_context>
chip_gen: v7x
topology: tpu7x:2x2x1
jax: 0.10.0
libtpu: 0.0.40
codegen_flags: <defaults>
</compile_context>

<pallas_src>
import functools

import jax
import jax.numpy as jnp
from jax.experimental import pallas as pl
from jax.experimental.pallas import tpu as pltpu

PATCH = 16  # F.fold kernel_size == stride == 16


def _head_kernel(x_ref, w1_ref, b1_ref, w2_ref, b2_ref, o_ref, *, compute_dtype):
    # x_ref : (Rt, D)        row block of tokens (native input dtype)
    # w1_ref: (D, Hp)        first linear weight, pre-transposed (resident)
    # b1_ref: (1, Hp)        f32 (resident)
    # w2_ref: (Hp, 256)      second linear weight, pre-transposed (resident)
    # b2_ref: (1, 256)       f32 (resident)
    # o_ref : (Rt, 256)      lane-dense output block
    x = x_ref[...]
    if x.dtype != compute_dtype:
        x = x.astype(compute_dtype)                       # in-kernel cast (no extra HBM pass)

    # Linear -> ReLU -> Linear.  MXU matmuls accumulate in f32; bias/ReLU in f32.
    h = jnp.dot(x, w1_ref[...], preferred_element_type=jnp.float32)
    h = jnp.maximum(h + b1_ref[...], 0.0)
    h = h.astype(w2_ref.dtype)
    y = jnp.dot(h, w2_ref[...], preferred_element_type=jnp.float32)
    o_ref[...] = (y + b2_ref[...]).astype(o_ref.dtype)    # one wide, unmasked store


def vicct_regression_head(pre_den, weights, crop_size, *,
                          compute_dtype=None, out_dtype=jnp.float32,
                          row_tile=512):
    """Equivalent of ViCCTRegressionHead_functional.forward.

    pre_den : (B, N, D) with N == (crop_size // 16) ** 2
    returns : (B, 1, crop_size, crop_size)
    """
    B, N, D = pre_den.shape
    assert crop_size % PATCH == 0
    hp = wp = crop_size // PATCH
    assert N == hp * wp, (N, hp, wp)

    w1 = jnp.asarray(weights['regression_head.regression_head.lin_scaler.0.weight'])  # (H, D)
    b1 = jnp.asarray(weights['regression_head.regression_head.lin_scaler.0.bias'])    # (H,)
    w2 = jnp.asarray(weights['regression_head.regression_head.lin_scaler.2.weight'])  # (256, H)
    b2 = jnp.asarray(weights['regression_head.regression_head.lin_scaler.2.bias'])    # (256,)
    H = w1.shape[0]
    C = w2.shape[0]
    assert C == PATCH * PATCH

    if compute_dtype is None:
        compute_dtype = pre_den.dtype
    compute_dtype = jnp.dtype(compute_dtype)
    out_dtype = jnp.dtype(out_dtype)

    # Pad the hidden dim to a multiple of 128 (weights only; activations untouched).
    Hpad = H if H % 128 == 0 else ((H + 127) // 128) * 128
    w1t = w1.T.astype(compute_dtype)                   # (D, H)
    w2t = w2.T.astype(compute_dtype)                   # (H, 256)
    b1r = b1.reshape(1, H).astype(jnp.float32)         # (1, H)
    if Hpad != H:
        w1t = jnp.pad(w1t, ((0, 0), (0, Hpad - H)))
        w2t = jnp.pad(w2t, ((0, Hpad - H), (0, 0)))
        b1r = jnp.pad(b1r, ((0, 0), (0, Hpad - H)))
    b2r = b2.reshape(1, C).astype(jnp.float32)         # (1, 256)

    # Flatten batch: contiguous (free) view; NO dtype cast here (cast is in-kernel).
    total = B * N
    x = pre_den.reshape(total, D)

    # Row tile: full extent when small, else 512 (multiple of 256 and of 8).
    Rt = total if total <= row_tile else row_tile
    grid = (pl.cdiv(total, Rt),)

    # VMEM budget derived from actual buffers (double-buffered in/out, resident
    # weights, f32 intermediates), clamped for v7x's 64 MiB physical VMEM.
    in_bytes = Rt * D * jnp.dtype(pre_den.dtype).itemsize
    out_bytes = Rt * C * out_dtype.itemsize
    w_bytes = (D + C) * Hpad * compute_dtype.itemsize + (Hpad + C) * 4
    tmp_bytes = Rt * (Hpad + C) * 4
    vmem_est = 2 * (in_bytes + out_bytes + w_bytes) + tmp_bytes
    vmem_limit = int(min(max(2 * vmem_est, 16 * 1024 * 1024), 64 * 1024 * 1024))

    kernel = functools.partial(_head_kernel, compute_dtype=compute_dtype)

    out = pl.pallas_call(
        kernel,
        out_shape=jax.ShapeDtypeStruct((total, C), out_dtype),
        grid=grid,
        in_specs=[
            pl.BlockSpec((Rt, D), lambda i: (i, 0)),       # pipelined row block
            pl.BlockSpec((D, Hpad), lambda i: (0, 0)),     # resident weights
            pl.BlockSpec((1, Hpad), lambda i: (0, 0)),
            pl.BlockSpec((Hpad, C), lambda i: (0, 0)),
            pl.BlockSpec((1, C), lambda i: (0, 0)),
        ],
        out_specs=pl.BlockSpec((Rt, C), lambda i: (i, 0)),  # lane-dense (256) output
        compiler_params=pltpu.CompilerParams(
            dimension_semantics=("parallel",),              # shards row blocks over v7x's 2 TCs
            vmem_limit_bytes=vmem_limit,
        ),
    )(x, w1t, b1r, w2t, b2r)

    # F.fold (kernel_size == stride == 16) as a tiny wrapper-side layout pass:
    #   den[b, 0, hp*16+kh, wp*16+kw] = out[b*N + hp*Wp + wp, kh*16+kw]
    y = out.reshape(B, hp, wp, PATCH, PATCH)               # (b, hp, wp, kh, kw)
    den = jnp.transpose(y, (0, 1, 3, 2, 4)).reshape(B, 1, crop_size, crop_size)
    return den


def _reference(pre_den, weights, crop_size):
    """Pure-JAX f32 reference (mirrors the PyTorch module)."""
    w1 = weights['regression_head.regression_head.lin_scaler.0.weight']
    b1 = weights['regression_head.regression_head.lin_scaler.0.bias']
    w2 = weights['regression_head.regression_head.lin_scaler.2.weight']
    b2 = weights['regression_head.regression_head.lin_scaler.2.bias']
    x = pre_den @ w1.T + b1
    x = jnp.maximum(x, 0.0)
    x = x @ w2.T + b2                                    # (B, N, 256)
    x = jnp.transpose(x, (0, 2, 1))                      # (B, 256, N)
    B = x.shape[0]
    Hp = Wp = crop_size // PATCH
    x = x.reshape(B, PATCH, PATCH, Hp, Wp)               # (B, kh, kw, hp, wp)
    x = jnp.transpose(x, (0, 3, 1, 4, 2)).reshape(B, 1, crop_size, crop_size)
    return x


if __name__ == "__main__":
    key = jax.random.PRNGKey(0)
    k_x, k_w1, k_b1, k_w2, k_b2 = jax.random.split(key, 5)

    # Small, consistent shapes: crop=64 -> N=(64/16)^2=16 patches, embed=32, hidden=64.
    B, crop_size, D, H = 2, 64, 32, 64
    N = (crop_size // PATCH) ** 2

    pre_den = jax.random.normal(k_x, (B, N, D), dtype=jnp.float32)
    weights = {
        'regression_head.regression_head.lin_scaler.0.weight':
            0.1 * jax.random.normal(k_w1, (H, D), dtype=jnp.float32),
        'regression_head.regression_head.lin_scaler.0.bias':
            0.1 * jax.random.normal(k_b1, (H,), dtype=jnp.float32),
        'regression_head.regression_head.lin_scaler.2.weight':
            0.1 * jax.random.normal(k_w2, (256, H), dtype=jnp.float32),
        'regression_head.regression_head.lin_scaler.2.bias':
            0.1 * jax.random.normal(k_b2, (256,), dtype=jnp.float32),
    }

    ref = _reference(pre_den, weights, crop_size)

    # f32 compute path: exact to 1e-5 vs reference.
    den = vicct_regression_head(pre_den, weights, crop_size)
    den = jax.block_until_ready(den)
    assert den.shape == (B, 1, crop_size, crop_size), den.shape
    assert jnp.allclose(den, ref, atol=1e-5, rtol=1e-5), "f32 path mismatch vs reference"

    # bf16 compute path (in-kernel activation cast, MXU-native bf16, f32 accum).
    den_bf16 = vicct_regression_head(pre_den, weights, crop_size,
                                     compute_dtype=jnp.bfloat16)
    den_bf16 = jax.block_until_ready(den_bf16)
    assert jnp.allclose(den_bf16, ref, atol=3e-2, rtol=3e-2), "bf16 path mismatch vs reference"

    # bf16 output path (lane-dense 256-wide stores, so bf16 writeback is safe).
    den_bf16_out = vicct_regression_head(pre_den, weights, crop_size,
                                         compute_dtype=jnp.bfloat16,
                                         out_dtype=jnp.bfloat16)
    den_bf16_out = jax.block_until_ready(den_bf16_out)
    assert jnp.allclose(den_bf16_out.astype(jnp.float32), ref, atol=5e-2, rtol=5e-2), \
        "bf16-out path mismatch vs reference"

    print("KERNEL_OK")
</pallas_src>

<mosaic_0001>
module attributes {stable_mosaic.version = 11 : i64} {
  func.func @_head_kernel(%arg0: i32, %arg1: memref<32x32xf32, #tpu.memory_space<vmem>>, %arg2: memref<32x128xf32, #tpu.memory_space<vmem>>, %arg3: memref<1x128xf32, #tpu.memory_space<vmem>>, %arg4: memref<128x256xf32, #tpu.memory_space<vmem>>, %arg5: memref<1x256xf32, #tpu.memory_space<vmem>>, %arg6: memref<32x256xf32, #tpu.memory_space<vmem>>) attributes {dimension_semantics = [#tpu.dimension_semantics<parallel>], iteration_bounds = array<i64: 1>, scalar_prefetch = 0 : i64, scratch_operands = 0 : i64, tpu.core_type = #tpu.core_type<tc>, window_params = [{transform_indices = @transform_0, window_bounds = array<i64: 32, 32>}, {pipeline_mode = #tpu.pipeline_mode<synchronous>, transform_indices = @transform_1, window_bounds = array<i64: 32, 128>}, {pipeline_mode = #tpu.pipeline_mode<synchronous>, transform_indices = @transform_2, window_bounds = array<i64: 1, 128>}, {pipeline_mode = #tpu.pipeline_mode<synchronous>, transform_indices = @transform_3, window_bounds = array<i64: 128, 256>}, {pipeline_mode = #tpu.pipeline_mode<synchronous>, transform_indices = @transform_4, window_bounds = array<i64: 1, 256>}, {transform_indices = @transform_5, window_bounds = array<i64: 32, 256>}]} {
    %c0 = arith.constant 0 : index
    %c0_0 = arith.constant 0 : index
    %0 = vector.load %arg1[%c0, %c0_0] : memref<32x32xf32, #tpu.memory_space<vmem>>, vector<32x32xf32>
    %c0_1 = arith.constant 0 : index
    %c0_2 = arith.constant 0 : index
    %1 = vector.load %arg2[%c0_1, %c0_2] : memref<32x128xf32, #tpu.memory_space<vmem>>, vector<32x128xf32>
    %cst = arith.constant dense<0.000000e+00> : vector<32x128xf32>
    %2 = tpu.matmul %0, %1, %cst {dimension_numbers = #tpu.dot_dimension_numbers<[1], [0], [0], [1], [0, 0, 1, 1], [], []>} : vector<32x32xf32>, vector<32x128xf32>, vector<32x128xf32> -> vector<32x128xf32>
    %c0_3 = arith.constant 0 : index
    %c0_4 = arith.constant 0 : index
    %3 = vector.load %arg3[%c0_3, %c0_4] : memref<1x128xf32, #tpu.memory_space<vmem>>, vector<1x128xf32>
    %4 = vector.broadcast %3 : vector<1x128xf32> to vector<32x128xf32>
    %5 = arith.addf %2, %4 : vector<32x128xf32>
    %cst_5 = arith.constant 0.000000e+00 : f32
    %6 = vector.broadcast %cst_5 : f32 to vector<32x128xf32>
    %7 = arith.maximumf %5, %6 : vector<32x128xf32>
    %c0_6 = arith.constant 0 : index
    %c0_7 = arith.constant 0 : index
    %8 = vector.load %arg4[%c0_6, %c0_7] : memref<128x256xf32, #tpu.memory_space<vmem>>, vector<128x256xf32>
    %cst_8 = arith.constant dense<0.000000e+00> : vector<32x256xf32>
    %9 = tpu.matmul %7, %8, %cst_8 {dimension_numbers = #tpu.dot_dimension_numbers<[1], [0], [0], [1], [0, 0, 1, 1], [], []>} : vector<32x128xf32>, vector<128x256xf32>, vector<32x256xf32> -> vector<32x256xf32>
    %c0_9 = arith.constant 0 : index
    %c0_10 = arith.constant 0 : index
    %10 = vector.load %arg5[%c0_9, %c0_10] : memref<1x256xf32, #tpu.memory_space<vmem>>, vector<1x256xf32>
    %11 = vector.broadcast %10 : vector<1x256xf32> to vector<32x256xf32>
    %12 = arith.addf %9, %11 : vector<32x256xf32>
    %c0_11 = arith.constant 0 : index
    %c0_12 = arith.constant 0 : index
    %13 = vector.load %arg6[%c0_11, %c0_12] : memref<32x256xf32, #tpu.memory_space<vmem>>, vector<32x256xf32>
    tpu.vector_store %arg6[%c0_11, %c0_12], %12 {strides = array<i32>} : memref<32x256xf32, #tpu.memory_space<vmem>>, vector<32x256xf32>,
    return
  }
  func.func @transform_0(%arg0: i32) -> (i32, i32) {
    %c0_i32 = arith.constant 0 : i32
    %c0_i32_0 = arith.constant 0 : i32
    return %arg0, %c0_i32 : i32, i32
  }
  func.func @transform_1(%arg0: i32) -> (i32, i32) {
    %c0_i32 = arith.constant 0 : i32
    %c0_i32_0 = arith.constant 0 : i32
    %c0_i32_1 = arith.constant 0 : i32
    return %c0_i32, %c0_i32_0 : i32, i32
  }
  func.func @transform_2(%arg0: i32) -> (i32, i32) {
    %c0_i32 = arith.constant 0 : i32
    %c0_i32_0 = arith.constant 0 : i32
    %c0_i32_1 = arith.constant 0 : i32
    return %c0_i32, %c0_i32_0 : i32, i32
  }
  func.func @transform_3(%arg0: i32) -> (i32, i32) {
    %c0_i32 = arith.constant 0 : i32
    %c0_i32_0 = arith.constant 0 : i32
    %c0_i32_1 = arith.constant 0 : i32
    return %c0_i32, %c0_i32_0 : i32, i32
  }
  func.func @transform_4(%arg0: i32) -> (i32, i32) {
    %c0_i32 = arith.constant 0 : i32
    %c0_i32_0 = arith.constant 0 : i32
    %c0_i32_1 = arith.constant 0 : i32
    return %c0_i32, %c0_i32_0 : i32, i32
  }
  func.func @transform_5(%arg0: i32) -> (i32, i32) {
    %c0_i32 = arith.constant 0 : i32
    %c0_i32_0 = arith.constant 0 : i32
    return %arg0, %c0_i32 : i32, i32
  }
}

</mosaic_0001>

<bundles_post_ra>
// kernel: tpu_custom_call.1
= control target key start
LH: loop header
LB: loop body
LE: loop exit
PB: predicated region body
PF: predicated region fallthrough
CT: control target
= control target key end

     0   :  { %10 = vsyncpa [#allocation3], 0  ;;  %s634_s0 = inlined_call_operand.hbm [shape: f32[32,32], index: 0, kind: input, shape index: {}]   ;;  %s635_s1 = inlined_call_operand.hbm [shape: f32[32,128], index: 1, kind: input, shape index: {}]   ;;  %s636_s2 = inlined_call_operand.vmem [shape: f32[1,128], index: 2, kind: input, shape index: {}]   ;;  %s637_s3 = inlined_call_operand.hbm [shape: f32[128,256], index: 3, kind: input, shape index: {}]   ;;  %s638_s4 = inlined_call_operand.vmem [shape: f32[1,256], index: 4, kind: input, shape index: {}]   ;;  %s639_s5 = inlined_call_operand.hbm [shape: f32[32,256], index: 5, kind: output, shape index: {}]  }
   0x1   :  { %11 = vsyncpa [#allocation6], 0 }
   0x2   :  { %12 = vsyncpa [#allocation4], 0  ;;  %s524_s18 = smov [#allocation5]   ;;  %s525_s20 = smov [#allocation2]  }
   0x3   :  { %s30_s19 = sshll.u32 %s524_s18, 4  ;;  %s18_s21 = sshll.u32 %s525_s20, 4  ;;  %s31_s19 = int_to_ptr.vmem [resolvable:$true] %s30_s19  ;;  %s563_s21 = int_to_ptr.vmem [resolvable:$true] %s18_s21 }
   0x4   :  { %s430_s24 = scalar_lea.hbm %s635_s1, 512 }
   0x5   :  { %p431_p0 = scmp.ne.s32.totalorder %s635_s1, %s430_s24  ;;  %p434_p1 = scmp.lt.u32.totalorder %s430_s24, %s635_s1 }
   0x7   :  { %p436_p2 = pnand %p434_p1, %p431_p0 }
   0x9   :  { %439 = shalt.err (!%p436_p2)
}
   0xa   :  { %s440_s29 = scalar_lea.vmem %s31_s19, 512  ;;  %p445_p4 = scmp.lt.s32.totalorder %s31_s19, %s31_s19 }
   0xb   :  { %p441_p3 = scmp.ne.s32.totalorder %s31_s19, %s440_s29  ;;  %p446_p5 = scmp.lt.s32.totalorder %s440_s29, %s440_s29 }
   0xd   :  { %p447_p6 = por %p446_p5, %p445_p4 }
   0xf   :  { %p448_p7 = pnand %p447_p6, %p441_p3 }
  0x11   :  { %451 = shalt.err (!%p448_p7)
}
  0x12   :  { %s526_s30 = smov 128   ;;  %s527_s6 = smov 8  }
  0x13   :  { %36 = dma.hbm_to_vmem [thread:$0]  %s635_s1, 512, %s31_s19, [#allocation6], %s526_s30, %s526_s30, %s527_s6  }
  0x14   :  { %s452_s11 = scalar_lea.hbm %s634_s0, 512 }
  0x15   :  { %p453_p8 = scmp.ne.s32.totalorder %s634_s0, %s452_s11  ;;  %p456_p9 = scmp.lt.u32.totalorder %s452_s11, %s634_s0 }
  0x17   :  { %p458_p10 = pnand %p456_p9, %p453_p8 }
  0x19   :  { %461 = shalt.err (!%p458_p10)
}
  0x1a   :  { %s462_s16 = scalar_lea.vmem %s563_s21, 512  ;;  %p467_p12 = scmp.lt.s32.totalorder %s563_s21, %s563_s21 }
  0x1b   :  { %p463_p11 = scmp.ne.s32.totalorder %s563_s21, %s462_s16  ;;  %p468_p13 = scmp.lt.s32.totalorder %s462_s16, %s462_s16 }
  0x1d   :  { %p469_p0 = por %p468_p13, %p467_p12 }
  0x1f   :  { %p470_p1 = pnand %p469_p0, %p463_p11 }
  0x21   :  { %473 = shalt.err (!%p470_p1)
}
  0x22   :  { %24 = dma.hbm_to_vmem [thread:$0]  %s634_s0, 512, %s563_s21, [#allocation3], %s526_s30, %s526_s30, %s527_s6  }
  0x23   :  { %s528_s18 = smov [#allocation7]   ;;  %s474_s23 = scalar_lea.hbm %s637_s3, 4096 }
  0x24   :  { %s44_s19 = sshll.u32 %s528_s18, 4  ;;  %p475_p2 = scmp.ne.s32.totalorder %s637_s3, %s474_s23  ;;  %s45_s19 = int_to_ptr.vmem [resolvable:$true] %s44_s19 }
  0x25   :  { %p478_p3 = scmp.lt.u32.totalorder %s474_s23, %s637_s3 }
  0x27   :  { %p480_p4 = pnand %p478_p3, %p475_p2 }
  0x29   :  { %483 = shalt.err (!%p480_p4)
}
  0x2a   :  { %s484_s28 = scalar_lea.vmem %s45_s19, 4096  ;;  %p489_p6 = scmp.lt.s32.totalorder %s45_s19, %s45_s19 }
  0x2b   :  { %p485_p5 = scmp.ne.s32.totalorder %s45_s19, %s484_s28  ;;  %p490_p7 = scmp.lt.s32.totalorder %s484_s28, %s484_s28 }
  0x2d   :  { %p491_p8 = por %p490_p7, %p489_p6 }
  0x2f   :  { %p492_p9 = pnand %p491_p8, %p485_p5 }
  0x31   :  { %495 = shalt.err (!%p492_p9)
}
  0x32   :  { %s529_s0 = smov 256   ;;  %s530_s21 = smov 16  }
  0x33   :  { %50 = dma.hbm_to_vmem [thread:$0]  %s637_s3, 4096, %s45_s19, [#allocation6], %s529_s0, %s529_s0, %s530_s21  }
  0x34   :  { %518 = dma.done.wait [#allocation3], 512  }
  0x35   :  { %519 = vsyncadd [#allocation3], 4294966784 }
  0x36   :  { %520 = dma.done.wait [#allocation6], 4608  }
  0x37   :  { %521 = vsyncadd [#allocation6], 4294962688  ;;  %vm77_vm0 = vcmask 261120   ;;  %v66_v0 = vld [vmem:[#allocation5] sm:$0xff]  ;;  %v67_v1 = vld [vmem:[#allocation5 + $0x8] sm:$0xff]  ;;  %v531_v58 = vmov 0.0  }
  0x38   :  { %v68_v2 = vld [vmem:[#allocation5 + $0x10] sm:$0xff]  ;;  %v365_v3 = vpack.c.bf16 %v67_v1, %v66_v0  ;;  %v69_v4 = vld [vmem:[#allocation5 + $0x18] sm:$0xff]  ;;  %v62_v5 = vld [vmem:[#allocation2] sm:$0xff]  ;;  %293 = vmatprep.mubr.f32.mxu1 %v531_v58 }
  0x39   :  { %v369_v6 = vpack.c.bf16 %v69_v4, %v68_v2  ;;  %359 = vmatprep.mubr.msk.f32.mxu0 %vm77_vm0, %v62_v5  ;;  %v180_v7 = vld [vmem:[#allocation7 + $0x8] sm:$0xff]  ;;  %v182_v8 = vld [vmem:[#allocation7 + $0x18] sm:$0xff]  ;;  %v179_v9 = vld [vmem:[#allocation7] sm:$0xff] }
  0x3a   :  { %366 = vmatprep.subr.bf16.mxu0 %v365_v3  ;;  %v181_v10 = vld [vmem:[#allocation7 + $0x10] sm:$0xff]  ;;  %v373_v11 = vpack.c.bf16 %v182_v8, %v180_v7  ;;  %v184_v13 = vld [vmem:[#allocation7 + $0x28] sm:$0xff]  ;;  %v186_v14 = vld [vmem:[#allocation7 + $0x38] sm:$0xff]  ;;  %v213_v8 = vlaneseq }
  0x3b   :  { %368 = vmatpush3.bf16.msra.mxu0 %v365_v3  ;;  %v375_v12 = vpack.c.bf16 %v181_v10, %v179_v9  ;;  %v183_v15 = vld [vmem:[#allocation7 + $0x20] sm:$0xff]  ;;  %v377_v16 = vpack.c.bf16 %v186_v14, %v184_v13  ;;  %v185_v17 = vld [vmem:[#allocation7 + $0x30] sm:$0xff]  ;;  %v188_v18 = vld [vmem:[#allocation7 + $0x48] sm:$0xff] }
  0x3c   :  { %370 = vmatprep.subr.bf16.mxu0 %v369_v6  ;;  %405 = vmatprep.subr.bf16.mxu1 %v373_v11  ;;  %v190_v19 = vld [vmem:[#allocation7 + $0x58] sm:$0xff]  ;;  %v379_v20 = vpack.c.bf16 %v185_v17, %v183_v15  ;;  %v63_v21 = vld [vmem:[#allocation2 + $0x8] sm:$0xff]  ;;  %v187_v22 = vld [vmem:[#allocation7 + $0x40] sm:$0xff]  ;;  %v214_v9 = vshrl.u32 %v213_v8, 7 }
  0x3d   :  { %413 = vmatpush1.bf16.msra.mxu1 %v375_v12  ;;  %v189_v23 = vld [vmem:[#allocation7 + $0x50] sm:$0xff]  ;;  %v381_v25 = vpack.c.bf16 %v190_v19, %v188_v18  ;;  %v192_v26 = vld [vmem:[#allocation7 + $0x68] sm:$0xff]  ;;  %v194_v27 = vld [vmem:[#allocation7 + $0x78] sm:$0xff] }
  0x3e   :  { %406 = vmatprep.subr.bf16.mxu1 %v377_v16  ;;  %v64_v24 = vld [vmem:[#allocation2 + $0x10] sm:$0xff]  ;;  %v383_v28 = vpack.c.bf16 %v189_v23, %v187_v22  ;;  %v65_v29 = vld [vmem:[#allocation2 + $0x18] sm:$0xff]  ;;  %v385_v30 = vpack.c.bf16 %v194_v27, %v192_v26  ;;  %v191_v31 = vld [vmem:[#allocation7 + $0x60] sm:$0xff]  ;;  %v215_v10 = vsub.s32 0, %v214_v9 }
  0x3f   :  { %372 = vmatpush3.bf16.msra.mxu0 %v369_v6  ;;  %v193_v32 = vld [vmem:[#allocation7 + $0x70] sm:$0xff]  ;;  %v196_v33 = vld [vmem:[#allocation7 + $0x88] sm:$0xff]  ;;  %v198_v34 = vld [vmem:[#allocation7 + $0x98] sm:$0xff] }
  0x40   :  { %374 = vmatprep.subr.bf16.mxu0 %v373_v11  ;;  %v387_v35 = vpack.c.bf16 %v193_v32, %v191_v31  ;;  %v389_v36 = vpack.c.bf16 %v198_v34, %v196_v33  ;;  %v195_v37 = vld [vmem:[#allocation7 + $0x80] sm:$0xff]  ;;  %v197_v38 = vld [vmem:[#allocation7 + $0x90] sm:$0xff]  ;;  %v200_v39 = vld [vmem:[#allocation7 + $0xa8] sm:$0xff] }
  0x41   :  { %414 = vmatpush1.bf16.msra.mxu1 %v379_v20  ;;  %v202_v40 = vld [vmem:[#allocation7 + $0xb8] sm:$0xff]  ;;  %v391_v41 = vpack.c.bf16 %v197_v38, %v195_v37  ;;  %v199_v43 = vld [vmem:[#allocation7 + $0xa0] sm:$0xff]  ;;  %v201_v44 = vld [vmem:[#allocation7 + $0xb0] sm:$0xff] }
  0x42   :  { %360 = vmatmul.mubr.msk.f32.vlgmr.msra.gmra.mrb[0].mxu0 %vm77_vm0, %v63_v21  ;;  %407 = vmatprep.subr.bf16.mxu1 %v381_v25  ;;  %v393_v42 = vpack.c.bf16 %v202_v40, %v200_v39  ;;  %v204_v45 = vld [vmem:[#allocation7 + $0xc8] sm:$0xff]  ;;  %v206_v46 = vld [vmem:[#allocation7 + $0xd8] sm:$0xff]  ;;  %v395_v47 = vpack.c.bf16 %v201_v44, %v199_v43  ;;  %v203_v49 = vld [vmem:[#allocation7 + $0xc0] sm:$0xff] }
  0x43   :  { %362 = vmatprep.mubr.msk.f32.mxu0 %vm77_vm0, %v64_v24  ;;  %376 = vmatpush1.bf16.msra.mxu0 %v375_v12  ;;  %v397_v48 = vpack.c.bf16 %v206_v46, %v204_v45  ;;  %v205_v50 = vld [vmem:[#allocation7 + $0xd0] sm:$0xff]  ;;  %v208_v52 = vld [vmem:[#allocation7 + $0xe8] sm:$0xff]  ;;  %v210_v53 = vld [vmem:[#allocation7 + $0xf8] sm:$0xff]  ;;  %v219_v12 = vsub.s32 1, %v214_v9 }
  0x44   :  { %378 = vmatprep.subr.bf16.mxu0 %v377_v16  ;;  %v399_v51 = vpack.c.bf16 %v205_v50, %v203_v49  ;;  %v401_v54 = vpack.c.bf16 %v210_v53, %v208_v52  ;;  %v207_v55 = vld [vmem:[#allocation7 + $0xe0] sm:$0xff]  ;;  %v209_v56 = vld [vmem:[#allocation7 + $0xf0] sm:$0xff] }
  0x45   :  { %415 = vmatpush1.bf16.msra.mxu1 %v383_v28  ;;  %v403_v57 = vpack.c.bf16 %v209_v56, %v207_v55  ;;  %v338_v59 = vld [vmem:[%s636_s2] ss:$0 sm:$0xff] }
  0x46   :  { %363 = vmatmul.mubr.msk.f32.gmra.mrb[2].mxu0 %vm77_vm0, %v65_v29  ;;  %408 = vmatprep.subr.bf16.mxu1 %v385_v30  ;;  %v211_v11 = vld [vmem:[%s638_s4] sm:$0x3]  ;;  %s532_s4 = smov [#allocation8]  }
  0x47   :  { %380 = vmatpush1.bf16.msra.mxu0 %v379_v20  ;;  %287 = vmatprep.mubr.f32.mxu0 %v531_v58  ;;  %v216_v13 = vrot.slane %v211_v11, %v215_v10  ;;  %v220_v14 = vrot.slane %v211_v11, %v219_v12  ;;  %s325_s8 = sshll.u32 %s532_s4, 4  ;;  %s326_s8 = int_to_ptr.vmem [resolvable:$true] %s325_s8 }
  0x48   :  { %382 = vmatprep.subr.bf16.mxu0 %v381_v25  ;;  %s496_s9 = scalar_lea.vmem %s326_s8, 1024  ;;  %p501_p11 = scmp.lt.s32.totalorder %s326_s8, %s326_s8 }
  0x49   :  { %416 = vmatpush1.bf16.msra.mxu1 %v387_v35  ;;  %p497_p10 = scmp.ne.s32.totalorder %s326_s8, %s496_s9  ;;  %p502_p12 = scmp.lt.s32.totalorder %s496_s9, %s496_s9 }
  0x4a   :  { %409 = vmatprep.subr.bf16.mxu1 %v389_v36 }
  0x4b   :  { %384 = vmatpush1.bf16.msra.mxu0 %v383_v28  ;;  %p503_p13 = por %p502_p12, %p501_p11 }
  0x4c   :  { %386 = vmatprep.subr.bf16.mxu0 %v385_v30 }
  0x4d   :  { %417 = vmatpush1.bf16.msra.mxu1 %v391_v41  ;;  %p504_p0 = pnand %p503_p13, %p497_p10 }
  0x4e   :  { %410 = vmatprep.subr.bf16.mxu1 %v393_v42 }
  0x4f   :  { %388 = vmatpush1.bf16.msra.mxu0 %v387_v35 }
  0x50   :  { %390 = vmatprep.subr.bf16.mxu0 %v389_v36 }
  0x51   :  { %418 = vmatpush1.bf16.msra.mxu1 %v395_v47 }
  0x52   :  { %411 = vmatprep.subr.bf16.mxu1 %v397_v48 }
  0x53   :  { %392 = vmatpush1.bf16.msra.mxu0 %v391_v41 }
  0x54   :  { %394 = vmatprep.subr.bf16.mxu0 %v393_v42 }
  0x55   :  { %419 = vmatpush1.bf16.msra.mxu1 %v399_v51 }
  0x56   :  { %412 = vmatprep.subr.bf16.mxu1 %v401_v54 }
  0x57   :  { %396 = vmatpush1.bf16.msra.mxu0 %v395_v47 }
  0x58   :  { %398 = vmatprep.subr.bf16.mxu0 %v397_v48 }
  0x59   :  { %420 = vmatpush1.bf16.msra.mxu1 %v403_v57 }
  0x5b   :  { %400 = vmatpush1.bf16.msra.mxu0 %v399_v51 }
  0x5c   :  { %402 = vmatprep.subr.bf16.mxu0 %v401_v54 }
  0x5f   :  { %404 = vmatpush1.bf16.msra.mxu0 %v403_v57 }
 0x115   :  { %v361_v60 = vpop.f32.mrb[0].mxu0 }
 0x116   :  { %v162_v61 = vadd.f32 %v361_v60, %v338_v59  ;;  %v156_v62 = vpop.f32.mrb[1].mxu0 }
 0x117   :  { %v157_v63 = vadd.f32 %v338_v59, %v156_v62 }
 0x118   :  { %v176_v0 = vmax.f32 %v162_v61, 0.0 }
 0x119   :  { %v175_v1 = vmax.f32 %v157_v63, 0.0  ;;  %v364_v2 = vpop.f32.mrb[2].mxu0 }
 0x11a   :  { %v166_v3 = vpop.f32.mrb[3].mxu0  ;;  %294 = vmatmul.mubr.f32.vlgmr.msra.gmra.mrb[0].mxu1 %v176_v0  ;;  %v172_v5 = vadd.f32 %v364_v2, %v338_v59 }
 0x11b   :  { %v167_v4 = vadd.f32 %v338_v59, %v166_v3  ;;  %288 = vmatmul.mubr.f32.vlgmr.msra.gmra.mrb[4].mxu0 %v175_v1  ;;  %299 = vmatprep.mubr.f32.mxu1 %v531_v58 }
 0x11c   :  { %v178_v7 = vmax.f32 %v172_v5, 0.0 }
 0x11d   :  { %v177_v6 = vmax.f32 %v167_v4, 0.0 }
 0x11f   :  { %300 = vmatmul.mubr.f32.gmra.mrb[2].mxu1 %v177_v6 }
 0x120   :  { %305 = vmatprep.mubr.f32.mxu1 %v531_v58 }
 0x123   :  { %306 = vmatmul.mubr.f32.gmra.mrb[4].mxu1 %v178_v7 }
 0x1ed   :  { %v295_v15 = vpop.f32.mrb[0].mxu1 }
 0x1ee   :  { %v296_v16 = vadd.f32 %v295_v15, %v216_v13  ;;  %v289_v17 = vpop.f32.mrb[4].mxu0  ;;  %v297_v18 = vpop.f32.mrb[1].mxu1 }
 0x1ef   :  { %v290_v19 = vadd.f32 %v289_v17, %v216_v13  ;;  %v298_v20 = vadd.f32 %v297_v18, %v220_v14  ;;  %v291_v21 = vpop.f32.mrb[5].mxu0 }
 0x1f0   :  { %314 = vst [vmem:[#allocation8 + $0x10] sm:$0xff] %v296_v16  ;;  %v292_v22 = vadd.f32 %v291_v21, %v220_v14 }
 0x1f1   :  { %312 = vst [vmem:[#allocation8] sm:$0xff] %v290_v19  ;;  %315 = vst [vmem:[#allocation8 + $0x18] sm:$0xff] %v298_v20 }
 0x1f2   :  { %313 = vst [vmem:[#allocation8 + $0x8] sm:$0xff] %v292_v22  ;;  %v301_v23 = vpop.f32.mrb[2].mxu1 }
 0x1f3   :  { %v302_v24 = vadd.f32 %v301_v23, %v216_v13  ;;  %v303_v25 = vpop.f32.mrb[3].mxu1 }
 0x1f4   :  { %v304_v26 = vadd.f32 %v303_v25, %v220_v14 }
 0x1f5   :  { %316 = vst [vmem:[#allocation8 + $0x20] sm:$0xff] %v302_v24 }
 0x1f6   :  { %317 = vst [vmem:[#allocation8 + $0x28] sm:$0xff] %v304_v26  ;;  %v307_v27 = vpop.f32.mrb[4].mxu1 }
 0x1f7   :  { %v308_v28 = vadd.f32 %v307_v27, %v216_v13  ;;  %v309_v29 = vpop.f32.mrb[5].mxu1 }
 0x1f8   :  { %v310_v30 = vadd.f32 %v309_v29, %v220_v14 }
 0x1f9   :  { %318 = vst [vmem:[#allocation8 + $0x30] sm:$0xff] %v308_v28 }
 0x1fa   :  { %319 = vst [vmem:[#allocation8 + $0x38] sm:$0xff] %v310_v30 }
 0x1fb   :  { %507 = shalt.err (!%p504_p0)
}
 0x1fc   :  { %s508_s12 = scalar_lea.hbm %s639_s5, 1024 }
 0x1fd   :  { %p509_p1 = scmp.ne.s32.totalorder %s639_s5, %s508_s12  ;;  %p512_p2 = scmp.lt.u32.totalorder %s508_s12, %s639_s5 }
 0x1ff   :  { %p514_p3 = pnand %p512_p2, %p509_p1 }
 0x201   :  { %517 = shalt.err (!%p514_p3)
}
 0x202   :  { %331 = dma.vmem_to_hbm [thread:$0]  %s326_s8, 1024, %s639_s5, [#allocation4], %s529_s0, %s529_s0, %s530_s21  }
 0x203   :  { %522 = dma.done.wait [#allocation4], 1024  }
 0x204   :  { %523 = vsyncadd [#allocation4], 4294966272 }
 0x205   :  { %335 = vsyncpa [#allocation3], 1 }
 0x206   :  { %336 = vsyncpa [#allocation6], 1 }
 0x207   :  { %337 = vsyncpa [#allocation4], 1 }

</bundles_post_ra>
